<compile_context>
chip_gen: v5e
topology: v5e:2x2
jax: 0.10.0
libtpu: 0.0.40
codegen_flags: <defaults>
</compile_context>

<pallas_src>
import functools

import jax
import jax.numpy as jnp
from jax.experimental import pallas as pl
from jax.experimental.pallas import tpu as pltpu

FC1_DIM = 128     # fc_1 output features (from the module spec)
OUT_PAD = 128     # lane-dense padded fc output width (real width = num_classes)
MAX_TB = 256      # batch-tile rows once the caller stacks a large batch


# ------------------------------ fused kernel -------------------------------

def _make_fused_kernel(num_layers, hidden, fc1_dim, out_pad):
    """Straight-line fused kernel: LSTM layers (seq_len==1, zero state) + head."""
    gate_w = 4 * hidden   # == 128 for hidden=32: one lane-dense gates vreg

    def kernel(*refs):
        x_ref = refs[0]
        w_refs = refs[1:1 + num_layers]                     # (in_dim, 4H) bf16
        fc1w_ref, fc2w_ref, b_ref, out_ref = refs[1 + num_layers:]

        h = x_ref[...].astype(jnp.bfloat16)
        off = 0
        for w_ref in w_refs:                                # unrolled at trace time
            gates = jnp.dot(h, w_ref[...], preferred_element_type=jnp.float32)
            gates = gates + b_ref[:, off:off + gate_w]      # (1, 4H) broadcast
            off += gate_w
            # One full-vreg sigmoid covers i|f|g|o (f multiplies c_prev == 0 and
            # is dead).  g and o are picked out with static 32-lane slices; the
            # realignment lands in the idle XLU slot.  Gate math stays f32.
            sig = jax.nn.sigmoid(gates)
            c = sig[:, :hidden] * jnp.tanh(gates[:, 2 * hidden:3 * hidden])
            h = (sig[:, 3 * hidden:4 * hidden] * jnp.tanh(c)).astype(jnp.bfloat16)

        z = jnp.dot(h, fc1w_ref[...], preferred_element_type=jnp.float32)
        z = z + b_ref[:, off:off + fc1_dim]
        off += fc1_dim
        # TODO(synk): nn.Dropout(0.3) is identity in eval mode; train-mode
        # masking would need pltpu.prng_random_bits — omitted for inference.
        z = jnp.maximum(z, 0.0)
        out = jnp.dot(z.astype(jnp.bfloat16), fc2w_ref[...],
                      preferred_element_type=jnp.float32)
        out_ref[...] = out + b_ref[:, off:off + out_pad]    # lane-dense store

    return kernel


@functools.partial(jax.jit, static_argnames=("num_classes",))
def lstm1_forward(packed, x, num_classes):
    w_list = packed["w_ih"]
    num_layers = len(w_list)
    hidden = packed["fc1_w"].shape[0]
    B, in_dim = x.shape

    # Batch tiling (review item #1/#3): one tile for small B; 256-row tiles with
    # a ("parallel",) grid when requests are stacked along the batch dim.
    if B <= MAX_TB:
        tb, b_pad = B, B
    else:
        tb = MAX_TB
        b_pad = pl.cdiv(B, tb) * tb
    if b_pad != B:
        x = jnp.pad(x, ((0, b_pad - B), (0, 0)))
    nb = b_pad // tb

    kernel = _make_fused_kernel(num_layers, hidden, FC1_DIM, OUT_PAD)

    const = lambda i: (0, 0)                       # weights/bias: VMEM-resident
    in_specs = [pl.BlockSpec((tb, in_dim), lambda i: (i, 0))]
    in_specs += [pl.BlockSpec(w.shape, const) for w in w_list]
    in_specs += [pl.BlockSpec(packed["fc1_w"].shape, const),
                 pl.BlockSpec(packed["fc2_w"].shape, const),
                 pl.BlockSpec(packed["b_all"].shape, const)]

    gate_w = 4 * hidden
    flops = 2 * b_pad * (in_dim * gate_w + (num_layers - 1) * hidden * gate_w
                         + hidden * FC1_DIM + FC1_DIM * OUT_PAD)
    transcendentals = b_pad * num_layers * (gate_w + 2 * hidden)
    w_bytes = (sum(int(w.size) for w in w_list) + int(packed["fc1_w"].size)
               + int(packed["fc2_w"].size)) * 2 + int(packed["b_all"].size) * 4
    bytes_accessed = w_bytes + b_pad * in_dim * 4 + b_pad * OUT_PAD * 4

    out_padded = pl.pallas_call(
        kernel,
        out_shape=jax.ShapeDtypeStruct((b_pad, OUT_PAD), jnp.float32),
        grid=(nb,),
        in_specs=in_specs,
        out_specs=pl.BlockSpec((tb, OUT_PAD), lambda i: (i, 0)),
        compiler_params=pltpu.CompilerParams(
            dimension_semantics=("parallel",)),
        cost_estimate=pl.CostEstimate(
            flops=flops, transcendentals=transcendentals,
            bytes_accessed=bytes_accessed),
    )(x, *w_list, packed["fc1_w"], packed["fc2_w"], packed["b_all"])

    # Slice padded rows/lanes off; .squeeze() matches torch's out.squeeze().
    return jnp.squeeze(out_padded[:B, :num_classes])


# --------------------------- params: init & pack ----------------------------

def init_params(key, num_classes, input_size, hidden_size, num_layers):
    """Deterministic synthetic parameters in PyTorch layout / init ranges."""
    params = {"lstm": []}
    bound = 1.0 / jnp.sqrt(hidden_size)
    for layer in range(num_layers):
        in_dim = input_size if layer == 0 else hidden_size
        key, k1, k2, k3 = jax.random.split(key, 4)
        w_ih = jax.random.uniform(k1, (4 * hidden_size, in_dim),
                                  jnp.float32, -bound, bound)
        b_ih = jax.random.uniform(k2, (4 * hidden_size,),
                                  jnp.float32, -bound, bound)
        b_hh = jax.random.uniform(k3, (4 * hidden_size,),
                                  jnp.float32, -bound, bound)
        params["lstm"].append((w_ih, b_ih + b_hh))
    key, k1, k2, k3, k4 = jax.random.split(key, 5)
    b1f = 1.0 / jnp.sqrt(hidden_size)
    params["fc1_w"] = jax.random.uniform(k1, (FC1_DIM, hidden_size),
                                         jnp.float32, -b1f, b1f)
    params["fc1_b"] = jax.random.uniform(k2, (FC1_DIM,), jnp.float32, -b1f, b1f)
    b2f = 1.0 / jnp.sqrt(float(FC1_DIM))
    params["fc2_w"] = jax.random.uniform(k3, (num_classes, FC1_DIM),
                                         jnp.float32, -b2f, b2f)
    params["fc2_b"] = jax.random.uniform(k4, (num_classes,),
                                         jnp.float32, -b2f, b2f)
    return params


def pack_params(params, hidden_size, num_classes):
    """Natural-width bf16 weights (torch gate order i|f|g|o) + one f32 bias buf.

    Per review: the per-gate 128-lane padding is gone — 4*H == 128 is already
    lane-dense, so layer weights stay at (in_dim, 4H) bf16 (e.g. 8 KB instead of
    the previous 128 KB for layer 1).  Only fc's tiny class dim is padded to 128
    so the final store is an unmasked lane-dense vst (padded lanes exact zeros).
    """
    w_list, b_parts = [], []
    for (w_ih, b) in params["lstm"]:
        w_list.append(w_ih.T.astype(jnp.bfloat16))          # (in_dim, 4H)
        b_parts.append(b)                                    # (4H,) = b_ih + b_hh
    w_fc1 = params["fc1_w"].T.astype(jnp.bfloat16)           # (H, 128)
    b_parts.append(params["fc1_b"])
    w_fc2 = jnp.pad(params["fc2_w"].T,
                    ((0, 0), (0, OUT_PAD - num_classes))).astype(jnp.bfloat16)
    b_parts.append(jnp.pad(params["fc2_b"], (0, OUT_PAD - num_classes)))
    b_all = jnp.concatenate(b_parts)[None, :]                # (1, L*4H + 128 + 128)
    return {"w_ih": w_list, "fc1_w": w_fc1, "fc2_w": w_fc2, "b_all": b_all}


# ------------------------------ f32 reference --------------------------------

def reference_forward(params, x):
    """Pure-JAX f32 reference of the module's eval-mode forward (seq_len==1)."""
    h = x
    for (w_ih, b) in params["lstm"]:
        H = w_ih.shape[0] // 4
        gates = h @ w_ih.T + b
        i = jax.nn.sigmoid(gates[:, :H])
        g = jnp.tanh(gates[:, 2 * H:3 * H])
        o = jax.nn.sigmoid(gates[:, 3 * H:])
        h = o * jnp.tanh(i * g)
    z = jnp.maximum(h @ params["fc1_w"].T + params["fc1_b"], 0.0)
    return jnp.squeeze(z @ params["fc2_w"].T + params["fc2_b"])


# ----------------------------------- main -----------------------------------

if __name__ == "__main__":
    num_classes = 4
    input_size = 16
    hidden_size = 32
    num_layers = 2
    batch = 8

    key = jax.random.PRNGKey(0)
    key, pkey, xkey = jax.random.split(key, 3)
    params = init_params(pkey, num_classes, input_size, hidden_size, num_layers)
    packed = pack_params(params, hidden_size, num_classes)
    x = jax.random.normal(xkey, (batch, input_size), jnp.float32)

    out = jax.block_until_ready(lstm1_forward(packed, x, num_classes))
    assert out.shape == (batch, num_classes), out.shape

    # Loose tolerance: bf16 weight storage + bf16 activation casts give ~1e-2
    # relative deviation from the f32 reference (expected, per review).
    ref = reference_forward(params, x)
    assert jnp.allclose(out, ref, rtol=3e-2, atol=3e-2), (
        float(jnp.max(jnp.abs(out - ref))))

    print("KERNEL_OK")
</pallas_src>

<mosaic_0001>
module attributes {stable_mosaic.version = 11 : i64} {
  func.func @kernel(%arg0: i32, %arg1: memref<8x16xf32, #tpu.memory_space<vmem>>, %arg2: memref<16x128xbf16, #tpu.memory_space<vmem>>, %arg3: memref<32x128xbf16, #tpu.memory_space<vmem>>, %arg4: memref<32x128xbf16, #tpu.memory_space<vmem>>, %arg5: memref<128x128xbf16, #tpu.memory_space<vmem>>, %arg6: memref<1x512xf32, #tpu.memory_space<vmem>>, %arg7: memref<8x128xf32, #tpu.memory_space<vmem>>) attributes {dimension_semantics = [#tpu.dimension_semantics<parallel>], iteration_bounds = array<i64: 1>, scalar_prefetch = 0 : i64, scratch_operands = 0 : i64, tpu.core_type = #tpu.core_type<tc>, window_params = [{transform_indices = @transform_0, window_bounds = array<i64: 8, 16>}, {pipeline_mode = #tpu.pipeline_mode<synchronous>, transform_indices = @transform_1, window_bounds = array<i64: 16, 128>}, {pipeline_mode = #tpu.pipeline_mode<synchronous>, transform_indices = @transform_2, window_bounds = array<i64: 32, 128>}, {pipeline_mode = #tpu.pipeline_mode<synchronous>, transform_indices = @transform_3, window_bounds = array<i64: 32, 128>}, {pipeline_mode = #tpu.pipeline_mode<synchronous>, transform_indices = @transform_4, window_bounds = array<i64: 128, 128>}, {pipeline_mode = #tpu.pipeline_mode<synchronous>, transform_indices = @transform_5, window_bounds = array<i64: 1, 512>}, {transform_indices = @transform_6, window_bounds = array<i64: 8, 128>}]} {
    %c0 = arith.constant 0 : index
    %c0_0 = arith.constant 0 : index
    %0 = vector.load %arg1[%c0, %c0_0] : memref<8x16xf32, #tpu.memory_space<vmem>>, vector<8x16xf32>
    %1 = arith.truncf %0 : vector<8x16xf32> to vector<8x16xbf16>
    %c0_1 = arith.constant 0 : index
    %c0_2 = arith.constant 0 : index
    %2 = vector.load %arg2[%c0_1, %c0_2] : memref<16x128xbf16, #tpu.memory_space<vmem>>, vector<16x128xbf16>
    %cst = arith.constant dense<0.000000e+00> : vector<8x128xf32>
    %3 = tpu.matmul %1, %2, %cst {dimension_numbers = #tpu.dot_dimension_numbers<[1], [0], [0], [1], [0, 0, 1, 1], [], []>} : vector<8x16xbf16>, vector<16x128xbf16>, vector<8x128xf32> -> vector<8x128xf32>
    %c0_3 = arith.constant 0 : index
    %c0_4 = arith.constant 0 : index
    %4 = vector.load %arg6[%c0_3, %c0_4] : memref<1x512xf32, #tpu.memory_space<vmem>>, vector<1x128xf32>
    %5 = vector.broadcast %4 : vector<1x128xf32> to vector<8x128xf32>
    %6 = arith.addf %3, %5 : vector<8x128xf32>
    %7 = arith.negf %6 : vector<8x128xf32>
    %8 = math.exp %7 : vector<8x128xf32>
    %cst_5 = arith.constant 1.000000e+00 : f32
    %9 = vector.broadcast %cst_5 : f32 to vector<8x128xf32>
    %10 = arith.addf %9, %8 : vector<8x128xf32>
    %11 = arith.divf %9, %10 : vector<8x128xf32>
    %12 = vector.extract_strided_slice %11 {offsets = [0, 0], sizes = [8, 32], strides = [1, 1]} : vector<8x128xf32> to vector<8x32xf32>
    %13 = vector.extract_strided_slice %6 {offsets = [0, 64], sizes = [8, 32], strides = [1, 1]} : vector<8x128xf32> to vector<8x32xf32>
    %14 = math.tanh %13 : vector<8x32xf32>
    %15 = arith.mulf %12, %14 : vector<8x32xf32>
    %16 = vector.extract_strided_slice %11 {offsets = [0, 96], sizes = [8, 32], strides = [1, 1]} : vector<8x128xf32> to vector<8x32xf32>
    %17 = math.tanh %15 : vector<8x32xf32>
    %18 = arith.mulf %16, %17 : vector<8x32xf32>
    %19 = arith.truncf %18 : vector<8x32xf32> to vector<8x32xbf16>
    %c0_6 = arith.constant 0 : index
    %c0_7 = arith.constant 0 : index
    %20 = vector.load %arg3[%c0_6, %c0_7] : memref<32x128xbf16, #tpu.memory_space<vmem>>, vector<32x128xbf16>
    %cst_8 = arith.constant dense<0.000000e+00> : vector<8x128xf32>
    %21 = tpu.matmul %19, %20, %cst_8 {dimension_numbers = #tpu.dot_dimension_numbers<[1], [0], [0], [1], [0, 0, 1, 1], [], []>} : vector<8x32xbf16>, vector<32x128xbf16>, vector<8x128xf32> -> vector<8x128xf32>
    %c0_9 = arith.constant 0 : index
    %c128 = arith.constant 128 : index
    %22 = vector.load %arg6[%c0_9, %c128] : memref<1x512xf32, #tpu.memory_space<vmem>>, vector<1x128xf32>
    %23 = vector.broadcast %22 : vector<1x128xf32> to vector<8x128xf32>
    %24 = arith.addf %21, %23 : vector<8x128xf32>
    %25 = arith.negf %24 : vector<8x128xf32>
    %26 = math.exp %25 : vector<8x128xf32>
    %cst_10 = arith.constant 1.000000e+00 : f32
    %27 = vector.broadcast %cst_10 : f32 to vector<8x128xf32>
    %28 = arith.addf %27, %26 : vector<8x128xf32>
    %29 = arith.divf %27, %28 : vector<8x128xf32>
    %30 = vector.extract_strided_slice %29 {offsets = [0, 0], sizes = [8, 32], strides = [1, 1]} : vector<8x128xf32> to vector<8x32xf32>
    %31 = vector.extract_strided_slice %24 {offsets = [0, 64], sizes = [8, 32], strides = [1, 1]} : vector<8x128xf32> to vector<8x32xf32>
    %32 = math.tanh %31 : vector<8x32xf32>
    %33 = arith.mulf %30, %32 : vector<8x32xf32>
    %34 = vector.extract_strided_slice %29 {offsets = [0, 96], sizes = [8, 32], strides = [1, 1]} : vector<8x128xf32> to vector<8x32xf32>
    %35 = math.tanh %33 : vector<8x32xf32>
    %36 = arith.mulf %34, %35 : vector<8x32xf32>
    %37 = arith.truncf %36 : vector<8x32xf32> to vector<8x32xbf16>
    %c0_11 = arith.constant 0 : index
    %c0_12 = arith.constant 0 : index
    %38 = vector.load %arg4[%c0_11, %c0_12] : memref<32x128xbf16, #tpu.memory_space<vmem>>, vector<32x128xbf16>
    %cst_13 = arith.constant dense<0.000000e+00> : vector<8x128xf32>
    %39 = tpu.matmul %37, %38, %cst_13 {dimension_numbers = #tpu.dot_dimension_numbers<[1], [0], [0], [1], [0, 0, 1, 1], [], []>} : vector<8x32xbf16>, vector<32x128xbf16>, vector<8x128xf32> -> vector<8x128xf32>
    %c0_14 = arith.constant 0 : index
    %c256 = arith.constant 256 : index
    %40 = vector.load %arg6[%c0_14, %c256] : memref<1x512xf32, #tpu.memory_space<vmem>>, vector<1x128xf32>
    %41 = vector.broadcast %40 : vector<1x128xf32> to vector<8x128xf32>
    %42 = arith.addf %39, %41 : vector<8x128xf32>
    %cst_15 = arith.constant 0.000000e+00 : f32
    %43 = vector.broadcast %cst_15 : f32 to vector<8x128xf32>
    %44 = arith.maximumf %42, %43 : vector<8x128xf32>
    %45 = arith.truncf %44 : vector<8x128xf32> to vector<8x128xbf16>
    %c0_16 = arith.constant 0 : index
    %c0_17 = arith.constant 0 : index
    %46 = vector.load %arg5[%c0_16, %c0_17] : memref<128x128xbf16, #tpu.memory_space<vmem>>, vector<128x128xbf16>
    %cst_18 = arith.constant dense<0.000000e+00> : vector<8x128xf32>
    %47 = tpu.matmul %45, %46, %cst_18 {dimension_numbers = #tpu.dot_dimension_numbers<[1], [0], [0], [1], [0, 0, 1, 1], [], []>} : vector<8x128xbf16>, vector<128x128xbf16>, vector<8x128xf32> -> vector<8x128xf32>
    %c0_19 = arith.constant 0 : index
    %c384 = arith.constant 384 : index
    %48 = vector.load %arg6[%c0_19, %c384] : memref<1x512xf32, #tpu.memory_space<vmem>>, vector<1x128xf32>
    %49 = vector.broadcast %48 : vector<1x128xf32> to vector<8x128xf32>
    %50 = arith.addf %47, %49 : vector<8x128xf32>
    %c0_20 = arith.constant 0 : index
    %c0_21 = arith.constant 0 : index
    %51 = vector.load %arg7[%c0_20, %c0_21] : memref<8x128xf32, #tpu.memory_space<vmem>>, vector<8x128xf32>
    tpu.vector_store %arg7[%c0_20, %c0_21], %50 {strides = array<i32>} : memref<8x128xf32, #tpu.memory_space<vmem>>, vector<8x128xf32>,
    return
  }
  func.func @transform_0(%arg0: i32) -> (i32, i32) {
    %c0_i32 = arith.constant 0 : i32
    %c0_i32_0 = arith.constant 0 : i32
    return %arg0, %c0_i32 : i32, i32
  }
  func.func @transform_1(%arg0: i32) -> (i32, i32) {
    %c0_i32 = arith.constant 0 : i32
    %c0_i32_0 = arith.constant 0 : i32
    %c0_i32_1 = arith.constant 0 : i32
    return %c0_i32, %c0_i32_0 : i32, i32
  }
  func.func @transform_2(%arg0: i32) -> (i32, i32) {
    %c0_i32 = arith.constant 0 : i32
    %c0_i32_0 = arith.constant 0 : i32
    %c0_i32_1 = arith.constant 0 : i32
    return %c0_i32, %c0_i32_0 : i32, i32
  }
  func.func @transform_3(%arg0: i32) -> (i32, i32) {
    %c0_i32 = arith.constant 0 : i32
    %c0_i32_0 = arith.constant 0 : i32
    %c0_i32_1 = arith.constant 0 : i32
    return %c0_i32, %c0_i32_0 : i32, i32
  }
  func.func @transform_4(%arg0: i32) -> (i32, i32) {
    %c0_i32 = arith.constant 0 : i32
    %c0_i32_0 = arith.constant 0 : i32
    %c0_i32_1 = arith.constant 0 : i32
    return %c0_i32, %c0_i32_0 : i32, i32
  }
  func.func @transform_5(%arg0: i32) -> (i32, i32) {
    %c0_i32 = arith.constant 0 : i32
    %c0_i32_0 = arith.constant 0 : i32
    %c0_i32_1 = arith.constant 0 : i32
    return %c0_i32, %c0_i32_0 : i32, i32
  }
  func.func @transform_6(%arg0: i32) -> (i32, i32) {
    %c0_i32 = arith.constant 0 : i32
    %c0_i32_0 = arith.constant 0 : i32
    return %arg0, %c0_i32 : i32, i32
  }
}

</mosaic_0001>

<bundles_post_ra>
// kernel: lstm1_forward.1
= control target key start
LH: loop header
LB: loop body
LE: loop exit
PB: predicated region body
PF: predicated region fallthrough
CT: control target
= control target key end

     0   :  { %11 = vsyncpa [#allocation3], 0  ;;  %s718_s0 = inlined_call_operand.hbm [shape: f32[8,16], index: 0, kind: input, shape index: {}]   ;;  %s719_s1 = inlined_call_operand.hbm [shape: bf16[16,128], index: 1, kind: input, shape index: {}]   ;;  %s720_s2 = inlined_call_operand.hbm [shape: bf16[32,128], index: 2, kind: input, shape index: {}]   ;;  %s721_s3 = inlined_call_operand.hbm [shape: bf16[32,128], index: 3, kind: input, shape index: {}]   ;;  %s722_s4 = inlined_call_operand.hbm [shape: bf16[128,128], index: 4, kind: input, shape index: {}]   ;;  %s723_s5 = inlined_call_operand.hbm [shape: f32[1,512], index: 5, kind: input, shape index: {}]   ;;  %s724_s6 = inlined_call_operand.vmem [shape: f32[8,128], index: 6, kind: output, shape index: {}]  }
   0x1   :  { %12 = vsyncpa [#allocation5], 0 }
   0x2   :  { %13 = vsyncpa [#allocation8], 0  ;;  %s30_s23 = sshll.u32 %s719_s1, 4  ;;  %s31_s23 = int_to_ptr.hbm [resolvable:$true] %s30_s23 }
   0x3   :  { %14 = vsyncpa [#allocation11], 0  ;;  %s632_s24 = smov [#allocation4]   ;;  %s56_s28 = sshll.u32 %s721_s3, 4  ;;  %s57_s28 = int_to_ptr.hbm [resolvable:$true] %s56_s28 }
   0x4   :  { %s32_s25 = sshll.u32 %s632_s24, 4  ;;  %s633_s29 = smov 64   ;;  %s33_s25 = int_to_ptr.vmem [resolvable:$true] %s32_s25 }
   0x5   :  { %s634_s30 = smov 4   ;;  %s635_s7 = smov [#allocation7]  }
   0x6   :  { %38 = dma.hbm_to_vmem [thread:$0]  %s31_s23, 128, %s33_s25, [#allocation5], %s633_s29, %s633_s29, %s634_s30  }
   0x7   :  { %s58_s8 = sshll.u32 %s635_s7, 4  ;;  %s20_s10 = sshll.u32 %s718_s0, 4  ;;  %s59_s8 = int_to_ptr.vmem [resolvable:$true] %s58_s8  ;;  %s21_s10 = int_to_ptr.hbm [resolvable:$true] %s20_s10 }
   0x8   :  { %64 = dma.hbm_to_vmem [thread:$0]  %s57_s28, 256, %s59_s8, [#allocation8], %s633_s29, %s633_s29, %s634_s30  }
   0x9   :  { %s43_s12 = sshll.u32 %s720_s2, 4  ;;  %s636_s13 = smov [#allocation2]   ;;  %s44_s12 = int_to_ptr.hbm [resolvable:$true] %s43_s12 }
   0xa   :  { %s22_s14 = sshll.u32 %s636_s13, 4  ;;  %s637_s15 = smov [#allocation6]   ;;  %s23_s14 = int_to_ptr.vmem [resolvable:$true] %s22_s14 }
   0xb   :  { %25 = dma.hbm_to_vmem [thread:$0]  %s21_s10, 128, %s23_s14, [#allocation3]  }
   0xc   :  { %s45_s16 = sshll.u32 %s637_s15, 4  ;;  %s69_s0 = sshll.u32 %s722_s4, 4  ;;  %s46_s16 = int_to_ptr.vmem [resolvable:$true] %s45_s16  ;;  %s70_s0 = int_to_ptr.hbm [resolvable:$true] %s69_s0 }
   0xd   :  { %51 = dma.hbm_to_vmem [thread:$0]  %s44_s12, 256, %s46_s16, [#allocation5], %s633_s29, %s633_s29, %s634_s30  }
   0xe   :  { %s83_s2 = sshll.u32 %s723_s5, 4  ;;  %s638_s21 = smov [#allocation9]   ;;  %s84_s2 = int_to_ptr.hbm [resolvable:$true] %s83_s2 }
   0xf   :  { %s71_s22 = sshll.u32 %s638_s21, 4  ;;  %s639_s23 = smov [#allocation10]   ;;  %s72_s22 = int_to_ptr.vmem [resolvable:$true] %s71_s22 }
  0x10   :  { %77 = dma.hbm_to_vmem [thread:$0]  %s70_s0, 1024, %s72_s22, [#allocation8], %s633_s29, %s633_s29, %s634_s30  }
  0x11   :  { %s85_s4 = sshll.u32 %s639_s23, 4  ;;  %s86_s4 = int_to_ptr.vmem [resolvable:$true] %s85_s4 }
  0x12   :  { %88 = dma.hbm_to_vmem [thread:$0]  %s84_s2, 64, %s86_s4, [#allocation11]  }
  0x13   :  { %624 = dma.done.wait [#allocation3], 128  }
  0x14   :  { %625 = vsyncadd [#allocation3], 4294967168 }
  0x15   :  { %626 = dma.done.wait [#allocation5], 384  }
  0x16   :  { %627 = vsyncadd [#allocation5], 4294966912 }
  0x17   :  { %628 = dma.done.wait [#allocation8], 1280  }
  0x18   :  { %629 = vsyncadd [#allocation8], 4294966016 }
  0x19   :  { %630 = dma.done.wait [#allocation11], 64  }
  0x1a   :  { %631 = vsyncadd [#allocation11], 4294967232  ;;  %v437_v0 = vld [vmem:[#allocation4] sm:$0xff]  ;;  %v114_v1 = vld [vmem:[#allocation2] sm:$0xff]  ;;  %vm128_vm0 = vcmask 130048   ;;  %s640_s5 = smov 96  }
  0x1b   :  { %v115_v2 = vpack.c.bf16 %v114_v1, %v114_v1  ;;  %139 = vmatpush.bf16.msra.mxu0 %v437_v0  ;;  %v460_v3 = vld [vmem:[#allocation10] ss:$0 sm:$0xff]  ;;  %v439_v24 = vld [vmem:[#allocation6 + $0x8] sm:$0xff]  ;;  %s641_s24 = smov 32   ;;  %vm200_vm5 = vcmask 261120   ;;  %v441_v51 = vld [vmem:[#allocation7 + $0x8] sm:$0xff] }
  0x1c   :  { %210 = vmatpush.bf16.msra.mxu1 %v439_v24  ;;  %v438_v25 = vld [vmem:[#allocation6] sm:$0xff]  ;;  %281 = vmatpush.bf16.msra.mxu2 %v441_v51  ;;  %v440_v52 = vld [vmem:[#allocation7] sm:$0xff]  ;;  %v449_v56 = vld [vmem:[#allocation9 + $0x38] sm:$0xff] }
  0x1d   :  { %v461_v30 = vld [vmem:[#allocation10 + $0x1] ss:$0 sm:$0xff]  ;;  %358 = vmatpush.bf16.msra.mxu3 %v449_v56  ;;  %v448_v57 = vld [vmem:[#allocation9 + $0x30] sm:$0xff]  ;;  %v447_v58 = vld [vmem:[#allocation9 + $0x28] sm:$0xff] }
  0x1e   :  { %384 = vmatmul.msk.bf16.vlgmr.msra.gmra.mxu0 %vm128_vm0, %v115_v2  ;;  %v446_v59 = vld [vmem:[#allocation9 + $0x20] sm:$0xff]  ;;  %v445_v60 = vld [vmem:[#allocation9 + $0x18] sm:$0xff]  ;;  %v444_v61 = vld [vmem:[#allocation9 + $0x10] sm:$0xff] }
  0x1f   :  { %v443_v63 = vld [vmem:[#allocation9 + $0x8] sm:$0xff]  ;;  %v442_v0 = vld [vmem:[#allocation9] sm:$0xff] }
  0x20   :  { %211 = vmatpush.bf16.msra.mxu1 %v438_v25  ;;  %282 = vmatpush.bf16.msra.mxu2 %v440_v52  ;;  %v462_v1 = vld [vmem:[#allocation10 + $0x2] ss:$0 sm:$0xff] }
  0x21   :  { %359 = vmatpush.bf16.msra.mxu3 %v448_v57 }
  0x25   :  { %360 = vmatpush.bf16.msra.mxu3 %v447_v58 }
  0x29   :  { %361 = vmatpush.bf16.msra.mxu3 %v446_v59 }
  0x2d   :  { %362 = vmatpush.bf16.msra.mxu3 %v445_v60 }
  0x31   :  { %363 = vmatpush.bf16.msra.mxu3 %v444_v61 }
  0x35   :  { %364 = vmatpush.bf16.msra.mxu3 %v443_v63 }
  0x39   :  { %365 = vmatpush.bf16.msra.mxu3 %v442_v0 }
  0x9b   :  { %v141_v4 = vpop.f32.mrf.mxu0 }
  0x9c   :  { %v142_v5 = vadd.f32 %v460_v3, %v141_v4 }
  0x9e   :  { %464 = vtanh.f32 %v142_v5  ;;  %v385_v8 = vmul.f32 -1.442695, %v142_v5 }
  0xa0   :  { %466 = vpow2.f32 %v385_v8 }
  0xa3   :  { %v143_v6 = vpop.f32.mrf.mxu0 }
  0xa4   :  { %v465_v7 = vpop.eup %464 }
  0xa5   :  { %166 = vrot.lane.b32.xlu0 %v465_v7, %s633_s29  ;;  %v463_v7 = vld [vmem:[#allocation10 + $0x3] ss:$0 sm:$0xff] }
  0xa6   :  { %v467_v9 = vpop.eup %466 }
  0xa7   :  { %v148_v10 = vadd.f32 1.0, %v467_v9 }
  0xa9   :  { %468 = vrcp.f32 %v148_v10  ;;  %v160_v16 = vand.u32 2147483648, %v148_v10  ;;  %vm154_vm2 = vweird.f32 %v148_v10  ;;  %v158_v17 = vand.u32 2147483647, %v148_v10 }
  0xab   :  { %v161_v19 = vor.u32 1.1754944e-38, %v160_v16  ;;  %vm159_vm4 = vcmp.eq.f32.partialorder %v158_v17, 8.507059e+37 }
  0xaf   :  { %v469_v11 = vpop.eup %468 }
  0xb0   :  { %v150_v12 = vmul.f32 %v469_v11, %v148_v10  ;;  %vm155_vm1 = vweird.f32 %v469_v11 }
  0xb1   :  { %vm156_vm3 = vmor %vm154_vm2, %vm155_vm1 }
  0xb2   :  { %v151_v13 = vsub.f32 1.0, %v150_v12 }
  0xb4   :  { %v152_v14 = vmul.f32 %v469_v11, %v151_v13 }
  0xb6   :  { %v153_v15 = vadd.f32 %v469_v11, %v152_v14 }
  0xb8   :  { %v157_v18 = vsel %vm156_vm3, %v469_v11, %v153_v15 }
  0xb9   :  { %v162_v21 = vsel %vm159_vm4, %v161_v19, %v157_v18 }
 0x117   :  { %v167_v20 = vpop.permute.xlu0 %166 }
 0x118   :  { %v169_v22 = vmul.f32 %v167_v20, %v162_v21 }
 0x11a   :  { %470 = vtanh.f32 %v169_v22 }
 0x120   :  { %v471_v23 = vpop.eup %470 }
 0x121   :  { %172 = vrot.lane.b32.xlu0 %v471_v23, %s640_s5 }
 0x193   :  { %v173_v26 = vpop.permute.xlu0 %172 }
 0x194   :  { %v175_v27 = vmul.f32 %v173_v26, %v162_v21 }
 0x196   :  { %v176_v28 = vpack.c.bf16 %v175_v27, %v175_v27 }
 0x198   :  { %186 = vrot.lane.b32.xlu1 %v176_v28, %s641_s24 }
 0x20a   :  { %v187_v29 = vpop.permute.xlu1 %186 }
 0x20b   :  { %394 = vmatmul.msk.bf16.vlgmr.msra.gmra.mxu1 %vm200_vm5, %v187_v29 }
 0x288   :  { %v213_v31 = vpop.f32.mrf.mxu1 }
 0x289   :  { %v214_v32 = vadd.f32 %v461_v30, %v213_v31 }
 0x28b   :  { %472 = vtanh.f32 %v214_v32  ;;  %v395_v35 = vmul.f32 -1.442695, %v214_v32 }
 0x28d   :  { %474 = vpow2.f32 %v395_v35 }
 0x290   :  { %v215_v33 = vpop.f32.mrf.mxu1 }
 0x291   :  { %v473_v34 = vpop.eup %472 }
 0x292   :  { %238 = vrot.lane.b32.xlu1 %v473_v34, %s633_s29 }
 0x293   :  { %v475_v36 = vpop.eup %474 }
 0x294   :  { %v220_v37 = vadd.f32 1.0, %v475_v36 }
 0x296   :  { %476 = vrcp.f32 %v220_v37  ;;  %v232_v43 = vand.u32 2147483648, %v220_v37  ;;  %vm226_vm7 = vweird.f32 %v220_v37  ;;  %v230_v44 = vand.u32 2147483647, %v220_v37 }
 0x298   :  { %v233_v46 = vor.u32 1.1754944e-38, %v232_v43  ;;  %vm231_vm9 = vcmp.eq.f32.partialorder %v230_v44, 8.507059e+37 }
 0x29c   :  { %v477_v38 = vpop.eup %476 }
 0x29d   :  { %v222_v39 = vmul.f32 %v477_v38, %v220_v37  ;;  %vm227_vm6 = vweird.f32 %v477_v38 }
 0x29e   :  { %vm228_vm8 = vmor %vm226_vm7, %vm227_vm6 }
 0x29f   :  { %v223_v40 = vsub.f32 1.0, %v222_v39 }
 0x2a1   :  { %v224_v41 = vmul.f32 %v477_v38, %v223_v40 }
 0x2a3   :  { %v225_v42 = vadd.f32 %v477_v38, %v224_v41 }
 0x2a5   :  { %v229_v45 = vsel %vm228_vm8, %v477_v38, %v225_v42 }
 0x2a6   :  { %v234_v48 = vsel %vm231_vm9, %v233_v46, %v229_v45 }
 0x304   :  { %v239_v47 = vpop.permute.xlu1 %238 }
 0x305   :  { %v241_v49 = vmul.f32 %v239_v47, %v234_v48 }
 0x307   :  { %478 = vtanh.f32 %v241_v49 }
 0x30d   :  { %v479_v50 = vpop.eup %478 }
 0x30e   :  { %244 = vrot.lane.b32.xlu2 %v479_v50, %s640_s5 }
 0x368   :  { %v245_v53 = vpop.permute.xlu2 %244 }
 0x369   :  { %v247_v54 = vmul.f32 %v245_v53, %v234_v48 }
 0x36b   :  { %v248_v55 = vpack.c.bf16 %v247_v54, %v247_v54 }
 0x36d   :  { %258 = vrot.lane.b32.xlu2 %v248_v55, %s641_s24 }
 0x3c7   :  { %v259_v62 = vpop.permute.xlu2 %258 }
 0x3c8   :  { %404 = vmatmul.msk.bf16.vlgmr.msra.gmra.mxu2 %vm200_vm5, %v259_v62 }
 0x44b   :  { %v284_v2 = vpop.f32.mrf.mxu2 }
 0x44c   :  { %v285_v3 = vadd.f32 %v462_v1, %v284_v2 }
 0x44e   :  { %v288_v4 = vmax.f32 %v285_v3, 0.0 }
 0x450   :  { %v289_v5 = vpack.c.bf16 %v288_v4, %v288_v4 }
 0x452   :  { %366 = vmatmul.bf16.vlgmr.msra.gmra.mxu3 %v289_v5 }
 0x453   :  { %v286_v6 = vpop.f32.mrf.mxu2 }
 0x4d5   :  { %v367_v8 = vpop.f32.mrf.mxu3 }
 0x4d6   :  { %v368_v9 = vadd.f32 %v463_v7, %v367_v8 }
 0x4d8   :  { %371 = vst [vmem:[%s724_s6] sm:$0xff] %v368_v9 }
 0x4dd   :  { %v369_v10 = vpop.f32.mrf.mxu3 }
 0x4de   :  { %376 = vsyncpa [#allocation3], 1 }
 0x4df   :  { %377 = vsyncpa [#allocation5], 1 }
 0x4e0   :  { %378 = vsyncpa [#allocation8], 1 }
 0x4e1   :  { %379 = vsyncpa [#allocation11], 1 }

</bundles_post_ra>
